<compile_context>
chip_gen: v7x
topology: tpu7x:2x2x1
jax: 0.10.0
libtpu: 0.0.40
codegen_flags: <defaults>
</compile_context>

<pallas_src>
import math

import jax
import jax.numpy as jnp
from jax.experimental import pallas as pl
from jax.experimental.pallas import tpu as pltpu

_INV_SQRT2 = 0.7071067811865476  # 1/sqrt(2) for exact erf-GELU


def _round_up(x, m):
    return ((x + m - 1) // m) * m


def _cdiv(a, b):
    return (a + b - 1) // b


def _choose_m_tiling(m, block_m):
    """Balanced M tiling: minimizes ragged-tile waste and guarantees >=2 tiles
    (for v7x megacore) whenever M is big enough that splitting is worth it."""
    n_tiles = _cdiv(m, block_m)
    if n_tiles < 2 and m >= 256:
        n_tiles = 2
    tm = _round_up(_cdiv(m, n_tiles), 8)
    mp = _round_up(m, tm)
    return tm, mp


def _make_kernel(approximate_gelu):
    def kernel(x_ref, w1_ref, b1_ref, w2_ref, b2_ref, o_ref):
        # x: [TM, H] native dtype; w1: [H, Hp]; b1: [1, Hp] f32;
        # w2: [Hp, Lp]; b2: [1, Lp] f32; o: [TM, Lp].
        # In-kernel cast: x streams from HBM once in its native dtype and is
        # narrowed to the MXU operand dtype (bf16 on the fast path) here.
        x = x_ref[...].astype(w1_ref.dtype)

        # classifier1: Linear(hidden, hidden) -- MXU matmul, f32 accumulation.
        h = jnp.dot(x, w1_ref[...], preferred_element_type=jnp.float32)
        h = h + b1_ref[...]

        if approximate_gelu:
            # tanh-form GELU: transcendental lands on the EUP slot (frees VALU).
            h = jax.nn.gelu(h, approximate=True)
        else:
            # F.gelu exact (erf-based, PyTorch default), computed in f32.
            h = 0.5 * h * (1.0 + jax.lax.erf(h * _INV_SQRT2))

        # Dropout: inference semantics -> identity.
        # TODO(synk): training-mode dropout (prng mask + 1/(1-p) scale) not emitted.

        # classifier2: Linear(hidden, num_label); cast activation back to the
        # narrow matmul dtype so both MXU operands are bf16 on the fast path.
        h = h.astype(w2_ref.dtype)
        out = jnp.dot(h, w2_ref[...], preferred_element_type=jnp.float32)
        out = out + b2_ref[...]
        o_ref[...] = out.astype(o_ref.dtype)

    return kernel


def prepare_classifier_params(w1, b1, w2, b2, *, use_bf16_matmul=True):
    """One-time (init-time) weight conversion: pad to lane-dense shapes and
    optionally cast to bf16. Weights are [in, out] (transposed vs nn.Linear).

    Padding scheme (x itself is never padded along H):
      W1: [H, Hp]  (only output columns padded)   b1: [1, Hp]
      W2: [Hp, Lp] (input rows + output cols pad)  b2: [1, Lp]
    Padded h columns are exactly zero (x @ 0 + 0 -> gelu(0) = 0) and multiply
    the zero rows of W2, so the pad never contaminates real outputs.
    """
    h_in, h_out = w1.shape
    assert h_in == h_out, "classifier1 must be square (hidden -> hidden)"
    hidden = h_in
    num_label = w2.shape[1]

    hp = _round_up(max(hidden, 128), 128)
    lp = _round_up(max(num_label, 128), 128)
    wdt = jnp.bfloat16 if use_bf16_matmul else jnp.float32

    w1p = jnp.pad(w1, ((0, 0), (0, hp - hidden))).astype(wdt)
    b1p = jnp.pad(b1, ((0, hp - hidden),)).reshape(1, hp).astype(jnp.float32)
    w2p = jnp.pad(w2, ((0, hp - hidden), (0, lp - num_label))).astype(wdt)
    b2p = jnp.pad(b2, ((0, lp - num_label),)).reshape(1, lp).astype(jnp.float32)

    return {
        "w1": w1p, "b1": b1p, "w2": w2p, "b2": b2p,
        "hidden": hidden, "num_label": num_label, "Hp": hp, "Lp": lp,
    }


def multi_nonlinear_classifier(x, params, *, block_m=512, out_dtype=None,
                               gelu_approximate=False):
    """x: [..., hidden]. params: from prepare_classifier_params().
    Returns [..., num_label]."""
    lead = x.shape[:-1]
    hidden = x.shape[-1]
    assert hidden == params["hidden"]
    num_label = params["num_label"]
    hp, lp = params["Hp"], params["Lp"]
    out_dtype = jnp.dtype(out_dtype or x.dtype)

    m = int(math.prod(lead)) if lead else 1
    tm, mp = _choose_m_tiling(m, block_m)

    x2d = x.reshape(m, hidden)
    if mp != m:
        # Only the (small, balanced) ragged-M remainder is padded; H is never padded.
        x2d = jnp.pad(x2d, ((0, mp - m), (0, 0)))

    # Explicit VMEM budget: x (double-buffered) + single-buffered weights +
    # f32/bf16 activation intermediates + double-buffered output, with margin.
    xb = x2d.dtype.itemsize
    wb = params["w1"].dtype.itemsize
    ob = out_dtype.itemsize
    est = (2 * tm * hidden * xb            # x tiles (2-deep pipeline)
           + hidden * hp * wb              # W1 (Buffered(1))
           + hp * lp * wb                  # W2 (Buffered(1))
           + (hp + lp) * 4                 # biases
           + 2 * tm * lp * ob              # out tiles (2-deep pipeline)
           + tm * hp * (4 + 4 + wb))       # h f32, gelu temps, bf16 copy
    vmem_limit = int(min(max(est * 13 // 10 + (2 << 20), 16 << 20), 64 << 20))

    resident = dict(pipeline_mode=pl.Buffered(1))  # weights stay VMEM-resident once

    out2d = pl.pallas_call(
        _make_kernel(gelu_approximate),
        out_shape=jax.ShapeDtypeStruct((mp, lp), out_dtype),
        grid_spec=pltpu.PrefetchScalarGridSpec(
            num_scalar_prefetch=0,
            grid=(mp // tm,),
            in_specs=[
                pl.BlockSpec((tm, hidden), lambda i: (i, 0)),             # x (streamed)
                pl.BlockSpec((hidden, hp), lambda i: (0, 0), **resident),  # W1
                pl.BlockSpec((1, hp), lambda i: (0, 0), **resident),       # b1
                pl.BlockSpec((hp, lp), lambda i: (0, 0), **resident),      # W2
                pl.BlockSpec((1, lp), lambda i: (0, 0), **resident),       # b2
            ],
            out_specs=pl.BlockSpec((tm, lp), lambda i: (i, 0)),
        ),
        compiler_params=pltpu.CompilerParams(
            # Independent M tiles -> shard across v7x's 2 TensorCores.
            dimension_semantics=("parallel",),
            vmem_limit_bytes=vmem_limit,
        ),
    )(x2d, params["w1"], params["b1"], params["w2"], params["b2"])

    return out2d[:m, :num_label].reshape(*lead, num_label)


if __name__ == "__main__":
    # Small shapes consistent with the module's forward.
    batch, seq, hidden, num_label = 2, 8, 32, 8
    dropout_rate = 0.1  # inference mode -> identity

    key = jax.random.PRNGKey(0)
    k_x, k_w1, k_b1, k_w2, k_b2 = jax.random.split(key, 5)

    x = jax.random.normal(k_x, (batch, seq, hidden), dtype=jnp.float32)

    # Deterministic parameter init (uniform, roughly nn.Linear scale).
    # Weights are stored [in, out] (transposed vs nn.Linear.weight).
    lim = 1.0 / jnp.sqrt(hidden)
    w1 = jax.random.uniform(k_w1, (hidden, hidden), jnp.float32, -lim, lim)
    b1 = jax.random.uniform(k_b1, (hidden,), jnp.float32, -lim, lim)
    w2 = jax.random.uniform(k_w2, (hidden, num_label), jnp.float32, -lim, lim)
    b2 = jax.random.uniform(k_b2, (num_label,), jnp.float32, -lim, lim)

    # Plain-JAX f32 reference (exact erf GELU, matching F.gelu default).
    h_ref = jnp.dot(x, w1) + b1
    h_ref = jax.nn.gelu(h_ref, approximate=False)
    ref = jnp.dot(h_ref, w2) + b2

    # 1) f32 path: parity with the reference.
    params_f32 = prepare_classifier_params(w1, b1, w2, b2, use_bf16_matmul=False)
    out_f32 = multi_nonlinear_classifier(x, params_f32)
    out_f32 = jax.block_until_ready(out_f32)
    assert out_f32.shape == (batch, seq, num_label)
    assert jnp.allclose(out_f32, ref, atol=1e-4, rtol=1e-4)

    # 2) bf16-MXU path (default / fast path): looser tolerance.
    params_bf16 = prepare_classifier_params(w1, b1, w2, b2, use_bf16_matmul=True)
    out_bf16 = multi_nonlinear_classifier(x, params_bf16)
    out_bf16 = jax.block_until_ready(out_bf16)
    assert out_bf16.shape == (batch, seq, num_label)
    assert jnp.allclose(out_bf16, ref, atol=3e-2, rtol=3e-2)

    print("KERNEL_OK")
</pallas_src>

<mosaic_0001>
module attributes {stable_mosaic.version = 11 : i64} {
  func.func @kernel(%arg0: i32, %arg1: memref<16x32xf32, #tpu.memory_space<vmem>>, %arg2: memref<32x128xf32, #tpu.memory_space<vmem>>, %arg3: memref<1x128xf32, #tpu.memory_space<vmem>>, %arg4: memref<128x128xf32, #tpu.memory_space<vmem>>, %arg5: memref<1x128xf32, #tpu.memory_space<vmem>>, %arg6: memref<16x128xf32, #tpu.memory_space<vmem>>) attributes {dimension_semantics = [#tpu.dimension_semantics<parallel>], iteration_bounds = array<i64: 1>, scalar_prefetch = 0 : i64, scratch_operands = 0 : i64, tpu.core_type = #tpu.core_type<tc>, window_params = [{transform_indices = @transform_0, window_bounds = array<i64: 16, 32>}, {pipeline_mode = #tpu.pipeline_mode<synchronous>, transform_indices = @transform_1, window_bounds = array<i64: 32, 128>}, {pipeline_mode = #tpu.pipeline_mode<synchronous>, transform_indices = @transform_2, window_bounds = array<i64: 1, 128>}, {pipeline_mode = #tpu.pipeline_mode<synchronous>, transform_indices = @transform_3, window_bounds = array<i64: 128, 128>}, {pipeline_mode = #tpu.pipeline_mode<synchronous>, transform_indices = @transform_4, window_bounds = array<i64: 1, 128>}, {transform_indices = @transform_5, window_bounds = array<i64: 16, 128>}]} {
    %c0 = arith.constant 0 : index
    %c0_0 = arith.constant 0 : index
    %0 = vector.load %arg1[%c0, %c0_0] : memref<16x32xf32, #tpu.memory_space<vmem>>, vector<16x32xf32>
    %c0_1 = arith.constant 0 : index
    %c0_2 = arith.constant 0 : index
    %1 = vector.load %arg2[%c0_1, %c0_2] : memref<32x128xf32, #tpu.memory_space<vmem>>, vector<32x128xf32>
    %cst = arith.constant dense<0.000000e+00> : vector<16x128xf32>
    %2 = tpu.matmul %0, %1, %cst {dimension_numbers = #tpu.dot_dimension_numbers<[1], [0], [0], [1], [0, 0, 1, 1], [], []>} : vector<16x32xf32>, vector<32x128xf32>, vector<16x128xf32> -> vector<16x128xf32>
    %c0_3 = arith.constant 0 : index
    %c0_4 = arith.constant 0 : index
    %3 = vector.load %arg3[%c0_3, %c0_4] : memref<1x128xf32, #tpu.memory_space<vmem>>, vector<1x128xf32>
    %4 = vector.broadcast %3 : vector<1x128xf32> to vector<16x128xf32>
    %5 = arith.addf %2, %4 : vector<16x128xf32>
    %cst_5 = arith.constant 5.000000e-01 : f32
    %6 = vector.broadcast %cst_5 : f32 to vector<16x128xf32>
    %7 = arith.mulf %6, %5 : vector<16x128xf32>
    %cst_6 = arith.constant 0.707106769 : f32
    %8 = vector.broadcast %cst_6 : f32 to vector<16x128xf32>
    %9 = arith.mulf %5, %8 : vector<16x128xf32>
    %10 = math.erf %9 : vector<16x128xf32>
    %cst_7 = arith.constant 1.000000e+00 : f32
    %11 = vector.broadcast %cst_7 : f32 to vector<16x128xf32>
    %12 = arith.addf %11, %10 : vector<16x128xf32>
    %13 = arith.mulf %7, %12 : vector<16x128xf32>
    %c0_8 = arith.constant 0 : index
    %c0_9 = arith.constant 0 : index
    %14 = vector.load %arg4[%c0_8, %c0_9] : memref<128x128xf32, #tpu.memory_space<vmem>>, vector<128x128xf32>
    %cst_10 = arith.constant dense<0.000000e+00> : vector<16x128xf32>
    %15 = tpu.matmul %13, %14, %cst_10 {dimension_numbers = #tpu.dot_dimension_numbers<[1], [0], [0], [1], [0, 0, 1, 1], [], []>} : vector<16x128xf32>, vector<128x128xf32>, vector<16x128xf32> -> vector<16x128xf32>
    %c0_11 = arith.constant 0 : index
    %c0_12 = arith.constant 0 : index
    %16 = vector.load %arg5[%c0_11, %c0_12] : memref<1x128xf32, #tpu.memory_space<vmem>>, vector<1x128xf32>
    %17 = vector.broadcast %16 : vector<1x128xf32> to vector<16x128xf32>
    %18 = arith.addf %15, %17 : vector<16x128xf32>
    %c0_13 = arith.constant 0 : index
    %c0_14 = arith.constant 0 : index
    %19 = vector.load %arg6[%c0_13, %c0_14] : memref<16x128xf32, #tpu.memory_space<vmem>>, vector<16x128xf32>
    tpu.vector_store %arg6[%c0_13, %c0_14], %18 {strides = array<i32>} : memref<16x128xf32, #tpu.memory_space<vmem>>, vector<16x128xf32>,
    return
  }
  func.func @transform_0(%arg0: i32) -> (i32, i32) {
    %c0_i32 = arith.constant 0 : i32
    %c0_i32_0 = arith.constant 0 : i32
    return %arg0, %c0_i32 : i32, i32
  }
  func.func @transform_1(%arg0: i32) -> (i32, i32) {
    %c0_i32 = arith.constant 0 : i32
    %c0_i32_0 = arith.constant 0 : i32
    %c0_i32_1 = arith.constant 0 : i32
    return %c0_i32, %c0_i32_0 : i32, i32
  }
  func.func @transform_2(%arg0: i32) -> (i32, i32) {
    %c0_i32 = arith.constant 0 : i32
    %c0_i32_0 = arith.constant 0 : i32
    %c0_i32_1 = arith.constant 0 : i32
    return %c0_i32, %c0_i32_0 : i32, i32
  }
  func.func @transform_3(%arg0: i32) -> (i32, i32) {
    %c0_i32 = arith.constant 0 : i32
    %c0_i32_0 = arith.constant 0 : i32
    %c0_i32_1 = arith.constant 0 : i32
    return %c0_i32, %c0_i32_0 : i32, i32
  }
  func.func @transform_4(%arg0: i32) -> (i32, i32) {
    %c0_i32 = arith.constant 0 : i32
    %c0_i32_0 = arith.constant 0 : i32
    %c0_i32_1 = arith.constant 0 : i32
    return %c0_i32, %c0_i32_0 : i32, i32
  }
  func.func @transform_5(%arg0: i32) -> (i32, i32) {
    %c0_i32 = arith.constant 0 : i32
    %c0_i32_0 = arith.constant 0 : i32
    return %arg0, %c0_i32 : i32, i32
  }
}

</mosaic_0001>

<bundles_post_ra>
// kernel: tpu_custom_call.1
= control target key start
LH: loop header
LB: loop body
LE: loop exit
PB: predicated region body
PF: predicated region fallthrough
CT: control target
= control target key end

     0   :  { %10 = vsyncpa [#allocation3], 0  ;;  %s614_s0 = inlined_call_operand.hbm [shape: f32[16,32], index: 0, kind: input, shape index: {}]   ;;  %s615_s1 = inlined_call_operand.hbm [shape: f32[32,128], index: 1, kind: input, shape index: {}]   ;;  %s616_s2 = inlined_call_operand.vmem [shape: f32[1,128], index: 2, kind: input, shape index: {}]   ;;  %s617_s3 = inlined_call_operand.hbm [shape: f32[128,128], index: 3, kind: input, shape index: {}]   ;;  %s618_s4 = inlined_call_operand.vmem [shape: f32[1,128], index: 4, kind: input, shape index: {}]   ;;  %s619_s5 = inlined_call_operand.hbm [shape: f32[16,128], index: 5, kind: output, shape index: {}]  }
   0x1   :  { %11 = vsyncpa [#allocation6], 0 }
   0x2   :  { %12 = vsyncpa [#allocation4], 0  ;;  %s503_s18 = smov [#allocation5]   ;;  %s504_s20 = smov [#allocation2]  }
   0x3   :  { %s30_s19 = sshll.u32 %s503_s18, 4  ;;  %s18_s21 = sshll.u32 %s504_s20, 4  ;;  %s31_s19 = int_to_ptr.vmem [resolvable:$true] %s30_s19  ;;  %s539_s21 = int_to_ptr.vmem [resolvable:$true] %s18_s21 }
   0x4   :  { %s409_s24 = scalar_lea.hbm %s615_s1, 512 }
   0x5   :  { %p410_p0 = scmp.ne.s32.totalorder %s615_s1, %s409_s24  ;;  %p413_p1 = scmp.lt.u32.totalorder %s409_s24, %s615_s1 }
   0x7   :  { %p415_p2 = pnand %p413_p1, %p410_p0 }
   0x9   :  { %418 = shalt.err (!%p415_p2)
}
   0xa   :  { %s419_s29 = scalar_lea.vmem %s31_s19, 512  ;;  %p424_p4 = scmp.lt.s32.totalorder %s31_s19, %s31_s19 }
   0xb   :  { %p420_p3 = scmp.ne.s32.totalorder %s31_s19, %s419_s29  ;;  %p425_p5 = scmp.lt.s32.totalorder %s419_s29, %s419_s29 }
   0xd   :  { %p426_p6 = por %p425_p5, %p424_p4 }
   0xf   :  { %p427_p7 = pnand %p426_p6, %p420_p3 }
  0x11   :  { %430 = shalt.err (!%p427_p7)
}
  0x12   :  { %s505_s30 = smov 128   ;;  %s506_s6 = smov 8  }
  0x13   :  { %36 = dma.hbm_to_vmem [thread:$0]  %s615_s1, 512, %s31_s19, [#allocation6], %s505_s30, %s505_s30, %s506_s6  }
  0x14   :  { %s431_s11 = scalar_lea.hbm %s614_s0, 256 }
  0x15   :  { %p432_p8 = scmp.ne.s32.totalorder %s614_s0, %s431_s11  ;;  %p435_p9 = scmp.lt.u32.totalorder %s431_s11, %s614_s0 }
  0x17   :  { %p437_p10 = pnand %p435_p9, %p432_p8 }
  0x19   :  { %440 = shalt.err (!%p437_p10)
}
  0x1a   :  { %s441_s16 = scalar_lea.vmem %s539_s21, 256  ;;  %p446_p12 = scmp.lt.s32.totalorder %s539_s21, %s539_s21 }
  0x1b   :  { %p442_p11 = scmp.ne.s32.totalorder %s539_s21, %s441_s16  ;;  %p447_p13 = scmp.lt.s32.totalorder %s441_s16, %s441_s16 }
  0x1d   :  { %p448_p0 = por %p447_p13, %p446_p12 }
  0x1f   :  { %p449_p1 = pnand %p448_p0, %p442_p11 }
  0x21   :  { %452 = shalt.err (!%p449_p1)
}
  0x22   :  { %24 = dma.hbm_to_vmem [thread:$0]  %s614_s0, 256, %s539_s21, [#allocation3], %s505_s30, %s505_s30, %s506_s6  }
  0x23   :  { %s507_s18 = smov [#allocation7]   ;;  %s453_s23 = scalar_lea.hbm %s617_s3, 2048 }
  0x24   :  { %s44_s19 = sshll.u32 %s507_s18, 4  ;;  %p454_p2 = scmp.ne.s32.totalorder %s617_s3, %s453_s23  ;;  %s45_s19 = int_to_ptr.vmem [resolvable:$true] %s44_s19 }
  0x25   :  { %p457_p3 = scmp.lt.u32.totalorder %s453_s23, %s617_s3 }
  0x27   :  { %p459_p4 = pnand %p457_p3, %p454_p2 }
  0x29   :  { %462 = shalt.err (!%p459_p4)
}
  0x2a   :  { %s463_s28 = scalar_lea.vmem %s45_s19, 2048  ;;  %p468_p6 = scmp.lt.s32.totalorder %s45_s19, %s45_s19 }
  0x2b   :  { %p464_p5 = scmp.ne.s32.totalorder %s45_s19, %s463_s28  ;;  %p469_p7 = scmp.lt.s32.totalorder %s463_s28, %s463_s28 }
  0x2d   :  { %p470_p8 = por %p469_p7, %p468_p6 }
  0x2f   :  { %p471_p9 = pnand %p470_p8, %p464_p5 }
  0x31   :  { %474 = shalt.err (!%p471_p9)
}
  0x32   :  { %50 = dma.hbm_to_vmem [thread:$0]  %s617_s3, 2048, %s45_s19, [#allocation6], %s505_s30, %s505_s30, %s506_s6  }
  0x33   :  { %497 = dma.done.wait [#allocation3], 256  }
  0x34   :  { %498 = vsyncadd [#allocation3], 4294967040 }
  0x35   :  { %499 = dma.done.wait [#allocation6], 2560  }
  0x36   :  { %500 = vsyncadd [#allocation6], 4294964736  ;;  %vm75_vm0 = vcmask 261120   ;;  %v64_v0 = vld [vmem:[#allocation5] sm:$0xff]  ;;  %v65_v1 = vld [vmem:[#allocation5 + $0x8] sm:$0xff]  ;;  %s508_s8 = smov [#allocation8]  }
  0x37   :  { %v66_v2 = vld [vmem:[#allocation5 + $0x10] sm:$0xff]  ;;  %v359_v3 = vpack.c.bf16 %v65_v1, %v64_v0  ;;  %v67_v4 = vld [vmem:[#allocation5 + $0x18] sm:$0xff]  ;;  %v167_v7 = vld [vmem:[#allocation7] sm:$0xff]  ;;  %s272_s9 = sshll.u32 %s508_s8, 4  ;;  %s273_s9 = int_to_ptr.vmem [resolvable:$true] %s272_s9 }
  0x38   :  { %v62_v5 = vld [vmem:[#allocation2] sm:$0xff]  ;;  %v363_v6 = vpack.c.bf16 %v67_v4, %v66_v2  ;;  %v168_v8 = vld [vmem:[#allocation7 + $0x8] sm:$0xff]  ;;  %v170_v11 = vld [vmem:[#allocation7 + $0x18] sm:$0xff]  ;;  %s475_s10 = scalar_lea.vmem %s273_s9, 256  ;;  %p480_p11 = scmp.lt.s32.totalorder %s273_s9, %s273_s9 }
  0x39   :  { %321 = vmatprep.mubr.msk.f32.mxu0 %vm75_vm0, %v62_v5  ;;  %v169_v9 = vld [vmem:[#allocation7 + $0x10] sm:$0xff]  ;;  %360 = vmatprep.subr.bf16.mxu0 %v359_v3  ;;  %v367_v10 = vpack.c.bf16 %v168_v8, %v167_v7  ;;  %v171_v13 = vld [vmem:[#allocation7 + $0x20] sm:$0xff]  ;;  %v172_v14 = vld [vmem:[#allocation7 + $0x28] sm:$0xff]  ;;  %p476_p10 = scmp.ne.s32.totalorder %s273_s9, %s475_s10  ;;  %p481_p12 = scmp.lt.s32.totalorder %s475_s10, %s475_s10 }
  0x3a   :  { %362 = vmatpush3.bf16.msra.mxu0 %v359_v3  ;;  %v371_v12 = vpack.c.bf16 %v170_v11, %v169_v9  ;;  %v375_v15 = vpack.c.bf16 %v172_v14, %v171_v13  ;;  %v63_v16 = vld [vmem:[#allocation2 + $0x8] sm:$0xff]  ;;  %v173_v17 = vld [vmem:[#allocation7 + $0x30] sm:$0xff]  ;;  %v175_v20 = vld [vmem:[#allocation7 + $0x40] sm:$0xff] }
  0x3b   :  { %364 = vmatprep.subr.bf16.mxu0 %v363_v6  ;;  %368 = vmatprep.subr.bf16.mxu1 %v367_v10  ;;  %v174_v18 = vld [vmem:[#allocation7 + $0x38] sm:$0xff]  ;;  %v176_v21 = vld [vmem:[#allocation7 + $0x48] sm:$0xff]  ;;  %v177_v23 = vld [vmem:[#allocation7 + $0x50] sm:$0xff]  ;;  %p482_p13 = por %p481_p12, %p480_p11 }
  0x3c   :  { %370 = vmatpush3.bf16.msra.mxu1 %v367_v10  ;;  %v379_v19 = vpack.c.bf16 %v174_v18, %v173_v17  ;;  %v383_v22 = vpack.c.bf16 %v176_v21, %v175_v20  ;;  %v178_v24 = vld [vmem:[#allocation7 + $0x58] sm:$0xff]  ;;  %v179_v26 = vld [vmem:[#allocation7 + $0x60] sm:$0xff]  ;;  %v180_v27 = vld [vmem:[#allocation7 + $0x68] sm:$0xff] }
  0x3d   :  { %372 = vmatprep.subr.bf16.mxu1 %v371_v12  ;;  %v387_v25 = vpack.c.bf16 %v178_v24, %v177_v23  ;;  %v391_v28 = vpack.c.bf16 %v180_v27, %v179_v26  ;;  %v181_v29 = vld [vmem:[#allocation7 + $0x70] sm:$0xff]  ;;  %v182_v30 = vld [vmem:[#allocation7 + $0x78] sm:$0xff]  ;;  %p483_p0 = pnand %p482_p13, %p476_p10 }
  0x3e   :  { %366 = vmatpush3.bf16.msra.mxu0 %v363_v6  ;;  %v395_v31 = vpack.c.bf16 %v182_v30, %v181_v29  ;;  %v285_v32 = vld [vmem:[%s616_s2] ss:$0 sm:$0xff] }
  0x3f   :  { %v288_v47 = vld [vmem:[%s618_s4] ss:$0 sm:$0xff] }
  0x40   :  { %374 = vmatpush3.bf16.msra.mxu1 %v371_v12 }
  0x41   :  { %322 = vmatmul.mubr.msk.f32.vlgmr.msra.gmra.mrb[0].mxu0 %vm75_vm0, %v63_v16  ;;  %376 = vmatprep.subr.bf16.mxu1 %v375_v15 }
  0x44   :  { %378 = vmatpush3.bf16.msra.mxu1 %v375_v15 }
  0x45   :  { %380 = vmatprep.subr.bf16.mxu1 %v379_v19 }
  0x48   :  { %382 = vmatpush3.bf16.msra.mxu1 %v379_v19 }
  0x49   :  { %384 = vmatprep.subr.bf16.mxu1 %v383_v22 }
  0x4c   :  { %386 = vmatpush3.bf16.msra.mxu1 %v383_v22 }
  0x4d   :  { %388 = vmatprep.subr.bf16.mxu1 %v387_v25 }
  0x50   :  { %390 = vmatpush3.bf16.msra.mxu1 %v387_v25 }
  0x51   :  { %392 = vmatprep.subr.bf16.mxu1 %v391_v28 }
  0x54   :  { %394 = vmatpush3.bf16.msra.mxu1 %v391_v28 }
  0x55   :  { %396 = vmatprep.subr.bf16.mxu1 %v395_v31 }
  0x58   :  { %398 = vmatpush3.bf16.msra.mxu1 %v395_v31 }
 0x114   :  { %v323_v33 = vpop.f32.mrb[0].mxu0 }
 0x115   :  { %v154_v34 = vadd.f32 %v323_v33, %v285_v32  ;;  %v148_v35 = vpop.f32.mrb[1].mxu0 }
 0x116   :  { %v149_v36 = vadd.f32 %v285_v32, %v148_v35 }
 0x117   :  { %v160_v37 = vmul.f32 0.70710677, %v154_v34  ;;  %v158_v44 = vmul.f32 0.5, %v154_v34 }
 0x118   :  { %v159_v38 = vmul.f32 0.70710677, %v149_v36  ;;  %v157_v42 = vmul.f32 0.5, %v149_v36 }
 0x119   :  { %405 = verf.f32 %v160_v37 }
 0x11a   :  { %407 = verf.f32 %v159_v38 }
 0x123   :  { %v406_v39 = vpop.eup %405 }
 0x124   :  { %v408_v40 = vpop.eup %407  ;;  %v164_v41 = vadd.f32 1.0, %v406_v39 }
 0x125   :  { %v163_v43 = vadd.f32 1.0, %v408_v40 }
 0x126   :  { %v166_v46 = vmul.f32 %v164_v41, %v158_v44 }
 0x127   :  { %v165_v45 = vmul.f32 %v163_v43, %v157_v42 }
 0x129   :  { %356 = vmatprep.mubr.f32.mxu1 %v165_v45 }
 0x12a   :  { %357 = vmatmul.mubr.f32.vlgmr.msra.gmra.mrb[0].mxu1 %v166_v46 }
 0x1fd   :  { %v358_v48 = vpop.f32.mrb[0].mxu1 }
 0x1fe   :  { %v262_v49 = vadd.f32 %v358_v48, %v288_v47  ;;  %v256_v50 = vpop.f32.mrb[1].mxu1 }
 0x1ff   :  { %v257_v51 = vadd.f32 %v288_v47, %v256_v50 }
 0x200   :  { %266 = vst [vmem:[#allocation8 + $0x8] sm:$0xff] %v262_v49 }
 0x201   :  { %265 = vst [vmem:[#allocation8] sm:$0xff] %v257_v51 }
 0x202   :  { %486 = shalt.err (!%p483_p0)
}
 0x203   :  { %s487_s4 = scalar_lea.hbm %s619_s5, 256 }
 0x204   :  { %p488_p1 = scmp.ne.s32.totalorder %s619_s5, %s487_s4  ;;  %p491_p2 = scmp.lt.u32.totalorder %s487_s4, %s619_s5 }
 0x206   :  { %p493_p3 = pnand %p491_p2, %p488_p1 }
 0x208   :  { %496 = shalt.err (!%p493_p3)
}
 0x209   :  { %278 = dma.vmem_to_hbm [thread:$0]  %s273_s9, 256, %s619_s5, [#allocation4], %s505_s30, %s505_s30, %s506_s6  }
 0x20a   :  { %501 = dma.done.wait [#allocation4], 256  }
 0x20b   :  { %502 = vsyncadd [#allocation4], 4294967040 }
 0x20c   :  { %282 = vsyncpa [#allocation3], 1 }
 0x20d   :  { %283 = vsyncpa [#allocation6], 1 }
 0x20e   :  { %284 = vsyncpa [#allocation4], 1 }

</bundles_post_ra>
